<compile_context>
chip_gen: v6e
topology: v6e:2x2x1
jax: 0.10.0
libtpu: 0.0.40
codegen_flags: <defaults>
</compile_context>

<pallas_src>
import functools

import jax
import jax.numpy as jnp
from jax.experimental import pallas as pl
from jax.experimental.pallas import tpu as pltpu


def mlp_kernel(x_ref, w1_ref, b1_ref, w2_ref, b2_ref, oT_ref):
    # x_ref : (TB, D)  batch tile in natural layout (no wrapper transpose/pad)
    # w1_ref: (H, D), b1_ref: (H, 1)
    # w2_ref: (O, H), b2_ref: (O, 1)
    # oT_ref: (O, TB)  lane-dense output (batch on the 128-lane axis)
    D = x_ref.shape[1]
    H = w1_ref.shape[0]

    # Move the batch tile onto the lane axis inside the kernel.  (tb, 4) -> (4, tb)
    # is a handful of XLU transposes; math stays f32 even if x streams in narrower.
    xT = x_ref[...].astype(jnp.float32).T                      # (D, TB)

    w1 = w1_ref[...]                                           # (H, D)
    w2 = w2_ref[...]                                           # (O, H)

    # Layer 1: h = w1 @ xT + b1, as K=4 unrolled VPU broadcast-FMAs.
    h = b1_ref[...] + w1[:, 0:1] * xT[0:1, :]                  # (H, TB)
    for k in range(1, D):
        h = h + w1[:, k:k + 1] * xT[k:k + 1, :]

    # Sigmoid via a single EUP push (exact identity: sigmoid(x) = 0.5*tanh(x/2)+0.5).
    h = 0.5 * jnp.tanh(0.5 * h) + 0.5

    # Layer 2: logits = w2 @ h + b2, as K=10 unrolled VPU broadcast-FMAs.
    logits = b2_ref[...] + w2[:, 0:1] * h[0:1, :]              # (O, TB)
    for k in range(1, H):
        logits = logits + w2[:, k:k + 1] * h[k:k + 1, :]

    # Softmax over the class axis (sublane axis, size O=3).  Reductions are
    # along sublanes only, so ragged/garbage batch lanes never contaminate
    # valid columns; out-of-range lanes are dropped on store.
    m = jnp.max(logits, axis=0, keepdims=True)
    e = jnp.exp(logits - m)
    denom = jnp.sum(e, axis=0, keepdims=True)
    oT_ref[...] = (e * pl.reciprocal(denom)).astype(oT_ref.dtype)


@functools.partial(jax.jit, static_argnames=("tb",))
def mlp_forward(x, w1, b1, w2, b2, *, tb=None):
    """x: (B, D); w1: (H, D), b1: (H,); w2: (O, H), b2: (O,) -> (B, O) probs."""
    B, D = x.shape
    H = w1.shape[0]
    O = w2.shape[0]

    if tb is None:
        # Small batch: one grid step (block == full array, so no divisibility
        # constraint and no padding pass).  Large batch: 2048-wide tiles keep
        # the stream HBM-bound and leave >=2 parallel steps for v7x's 2 TCs.
        tb = B if B <= 2048 else 2048
    n_tiles = pl.cdiv(B, tb)

    grid_spec = pltpu.PrefetchScalarGridSpec(
        num_scalar_prefetch=0,
        grid=(n_tiles,),
        in_specs=[
            # activations: streamed batch tiles, natural (B, D) layout
            pl.BlockSpec((tb, D), lambda i: (i, 0)),
            # weights / biases: constant block index -> stay VMEM-resident
            pl.BlockSpec((H, D), lambda i: (0, 0)),
            pl.BlockSpec((H, 1), lambda i: (0, 0)),
            pl.BlockSpec((O, H), lambda i: (0, 0)),
            pl.BlockSpec((O, 1), lambda i: (0, 0)),
        ],
        # lane-dense output: batch on the lane axis; ragged last tile's
        # out-of-range lanes are dropped on store.
        out_specs=pl.BlockSpec((O, tb), lambda i: (0, i)),
    )

    outT = pl.pallas_call(
        mlp_kernel,
        out_shape=jax.ShapeDtypeStruct((O, B), jnp.float32),
        grid_spec=grid_spec,
        compiler_params=pltpu.CompilerParams(
            dimension_semantics=("parallel",),
        ),
    )(x, w1, b1.reshape(H, 1), w2, b2.reshape(O, 1))

    # Tiny (3, B) -> (B, 3) transpose back to the PyTorch orientation.
    return outT.T


def init_params(key, input_dim=4, hidden_dim=10, output_dim=3):
    """PyTorch nn.Linear-style init (uniform +/- 1/sqrt(fan_in)), layout W:(out,in)."""
    k1, k2, k3, k4 = jax.random.split(key, 4)
    bound1 = 1.0 / (input_dim ** 0.5)
    bound2 = 1.0 / (hidden_dim ** 0.5)
    w1 = jax.random.uniform(k1, (hidden_dim, input_dim), jnp.float32, -bound1, bound1)
    b1 = jax.random.uniform(k2, (hidden_dim,), jnp.float32, -bound1, bound1)
    w2 = jax.random.uniform(k3, (output_dim, hidden_dim), jnp.float32, -bound2, bound2)
    b2 = jax.random.uniform(k4, (output_dim,), jnp.float32, -bound2, bound2)
    return w1, b1, w2, b2


if __name__ == "__main__":
    key = jax.random.PRNGKey(0)
    k_x, k_p = jax.random.split(key)

    # Shapes consistent with the module: input_dim=4, hidden_dim=10, output_dim=3.
    # B=200 runs as a single grid step (block == full array, no padding needed).
    B, input_dim, hidden_dim, output_dim = 200, 4, 10, 3
    x = jax.random.normal(k_x, (B, input_dim), jnp.float32)
    w1, b1, w2, b2 = init_params(k_p, input_dim, hidden_dim, output_dim)

    out = jax.block_until_ready(mlp_forward(x, w1, b1, w2, b2))

    # Pure-JAX reference (matches the PyTorch forward: linear -> sigmoid -> linear -> softmax)
    h_ref = jax.nn.sigmoid(x @ w1.T + b1)
    ref = jax.nn.softmax(h_ref @ w2.T + b2, axis=-1)

    assert out.shape == (B, output_dim)
    assert jnp.allclose(out, ref, atol=1e-4, rtol=1e-4), "mismatch vs reference"
    assert jnp.allclose(jnp.sum(out, axis=-1), 1.0, atol=1e-5), "rows must sum to 1"

    # TODO(synk): eval_counter / grad_counter (and the evaluate/get_params helpers)
    # are host-side Python bookkeeping, not part of the forward math; not modeled.
    print("KERNEL_OK")
</pallas_src>

<mosaic_0001>
module attributes {stable_mosaic.version = 11 : i64} {
  func.func @mlp_kernel(%arg0: i32, %arg1: memref<200x4xf32, #tpu.memory_space<vmem>>, %arg2: memref<10x4xf32, #tpu.memory_space<vmem>>, %arg3: memref<10x1xf32, #tpu.memory_space<vmem>>, %arg4: memref<3x10xf32, #tpu.memory_space<vmem>>, %arg5: memref<3x1xf32, #tpu.memory_space<vmem>>, %arg6: memref<3x200xf32, #tpu.memory_space<vmem>>) attributes {dimension_semantics = [#tpu.dimension_semantics<parallel>], iteration_bounds = array<i64: 1>, scalar_prefetch = 0 : i64, scratch_operands = 0 : i64, tpu.core_type = #tpu.core_type<tc>, window_params = [{transform_indices = @transform_0, window_bounds = array<i64: 200, 4>}, {pipeline_mode = #tpu.pipeline_mode<synchronous>, transform_indices = @transform_1, window_bounds = array<i64: 10, 4>}, {pipeline_mode = #tpu.pipeline_mode<synchronous>, transform_indices = @transform_2, window_bounds = array<i64: 10, 1>}, {pipeline_mode = #tpu.pipeline_mode<synchronous>, transform_indices = @transform_3, window_bounds = array<i64: 3, 10>}, {pipeline_mode = #tpu.pipeline_mode<synchronous>, transform_indices = @transform_4, window_bounds = array<i64: 3, 1>}, {transform_indices = @transform_5, window_bounds = array<i64: 3, 200>}]} {
    %c0 = arith.constant 0 : index
    %c0_0 = arith.constant 0 : index
    %0 = vector.load %arg1[%c0, %c0_0] : memref<200x4xf32, #tpu.memory_space<vmem>>, vector<200x4xf32>
    %1 = tpu.transpose %0, [1, 0] : vector<200x4xf32> -> vector<4x200xf32>
    %c0_1 = arith.constant 0 : index
    %c0_2 = arith.constant 0 : index
    %2 = vector.load %arg2[%c0_1, %c0_2] : memref<10x4xf32, #tpu.memory_space<vmem>>, vector<10x4xf32>
    %c0_3 = arith.constant 0 : index
    %c0_4 = arith.constant 0 : index
    %3 = vector.load %arg4[%c0_3, %c0_4] : memref<3x10xf32, #tpu.memory_space<vmem>>, vector<3x10xf32>
    %c0_5 = arith.constant 0 : index
    %c0_6 = arith.constant 0 : index
    %4 = vector.load %arg3[%c0_5, %c0_6] : memref<10x1xf32, #tpu.memory_space<vmem>>, vector<10x1xf32>
    %5 = vector.extract_strided_slice %2 {offsets = [0, 0], sizes = [10, 1], strides = [1, 1]} : vector<10x4xf32> to vector<10x1xf32>
    %6 = vector.extract_strided_slice %1 {offsets = [0, 0], sizes = [1, 200], strides = [1, 1]} : vector<4x200xf32> to vector<1x200xf32>
    %7 = vector.broadcast %5 : vector<10x1xf32> to vector<10x200xf32>
    %8 = vector.broadcast %6 : vector<1x200xf32> to vector<10x200xf32>
    %9 = arith.mulf %7, %8 : vector<10x200xf32>
    %10 = vector.broadcast %4 : vector<10x1xf32> to vector<10x200xf32>
    %11 = arith.addf %10, %9 : vector<10x200xf32>
    %12 = vector.extract_strided_slice %2 {offsets = [0, 1], sizes = [10, 1], strides = [1, 1]} : vector<10x4xf32> to vector<10x1xf32>
    %13 = vector.extract_strided_slice %1 {offsets = [1, 0], sizes = [1, 200], strides = [1, 1]} : vector<4x200xf32> to vector<1x200xf32>
    %14 = vector.broadcast %12 : vector<10x1xf32> to vector<10x200xf32>
    %15 = vector.broadcast %13 : vector<1x200xf32> to vector<10x200xf32>
    %16 = arith.mulf %14, %15 : vector<10x200xf32>
    %17 = arith.addf %11, %16 : vector<10x200xf32>
    %18 = vector.extract_strided_slice %2 {offsets = [0, 2], sizes = [10, 1], strides = [1, 1]} : vector<10x4xf32> to vector<10x1xf32>
    %19 = vector.extract_strided_slice %1 {offsets = [2, 0], sizes = [1, 200], strides = [1, 1]} : vector<4x200xf32> to vector<1x200xf32>
    %20 = vector.broadcast %18 : vector<10x1xf32> to vector<10x200xf32>
    %21 = vector.broadcast %19 : vector<1x200xf32> to vector<10x200xf32>
    %22 = arith.mulf %20, %21 : vector<10x200xf32>
    %23 = arith.addf %17, %22 : vector<10x200xf32>
    %24 = vector.extract_strided_slice %2 {offsets = [0, 3], sizes = [10, 1], strides = [1, 1]} : vector<10x4xf32> to vector<10x1xf32>
    %25 = vector.extract_strided_slice %1 {offsets = [3, 0], sizes = [1, 200], strides = [1, 1]} : vector<4x200xf32> to vector<1x200xf32>
    %26 = vector.broadcast %24 : vector<10x1xf32> to vector<10x200xf32>
    %27 = vector.broadcast %25 : vector<1x200xf32> to vector<10x200xf32>
    %28 = arith.mulf %26, %27 : vector<10x200xf32>
    %29 = arith.addf %23, %28 : vector<10x200xf32>
    %cst = arith.constant 5.000000e-01 : f32
    %30 = vector.broadcast %cst : f32 to vector<10x200xf32>
    %31 = arith.mulf %30, %29 : vector<10x200xf32>
    %32 = math.tanh %31 : vector<10x200xf32>
    %cst_7 = arith.constant 5.000000e-01 : f32
    %33 = vector.broadcast %cst_7 : f32 to vector<10x200xf32>
    %34 = arith.mulf %33, %32 : vector<10x200xf32>
    %cst_8 = arith.constant 5.000000e-01 : f32
    %35 = vector.broadcast %cst_8 : f32 to vector<10x200xf32>
    %36 = arith.addf %34, %35 : vector<10x200xf32>
    %c0_9 = arith.constant 0 : index
    %c0_10 = arith.constant 0 : index
    %37 = vector.load %arg5[%c0_9, %c0_10] : memref<3x1xf32, #tpu.memory_space<vmem>>, vector<3x1xf32>
    %38 = vector.extract_strided_slice %3 {offsets = [0, 0], sizes = [3, 1], strides = [1, 1]} : vector<3x10xf32> to vector<3x1xf32>
    %39 = vector.extract_strided_slice %36 {offsets = [0, 0], sizes = [1, 200], strides = [1, 1]} : vector<10x200xf32> to vector<1x200xf32>
    %40 = vector.broadcast %38 : vector<3x1xf32> to vector<3x200xf32>
    %41 = vector.broadcast %39 : vector<1x200xf32> to vector<3x200xf32>
    %42 = arith.mulf %40, %41 : vector<3x200xf32>
    %43 = vector.broadcast %37 : vector<3x1xf32> to vector<3x200xf32>
    %44 = arith.addf %43, %42 : vector<3x200xf32>
    %45 = vector.extract_strided_slice %3 {offsets = [0, 1], sizes = [3, 1], strides = [1, 1]} : vector<3x10xf32> to vector<3x1xf32>
    %46 = vector.extract_strided_slice %36 {offsets = [1, 0], sizes = [1, 200], strides = [1, 1]} : vector<10x200xf32> to vector<1x200xf32>
    %47 = vector.broadcast %45 : vector<3x1xf32> to vector<3x200xf32>
    %48 = vector.broadcast %46 : vector<1x200xf32> to vector<3x200xf32>
    %49 = arith.mulf %47, %48 : vector<3x200xf32>
    %50 = arith.addf %44, %49 : vector<3x200xf32>
    %51 = vector.extract_strided_slice %3 {offsets = [0, 2], sizes = [3, 1], strides = [1, 1]} : vector<3x10xf32> to vector<3x1xf32>
    %52 = vector.extract_strided_slice %36 {offsets = [2, 0], sizes = [1, 200], strides = [1, 1]} : vector<10x200xf32> to vector<1x200xf32>
    %53 = vector.broadcast %51 : vector<3x1xf32> to vector<3x200xf32>
    %54 = vector.broadcast %52 : vector<1x200xf32> to vector<3x200xf32>
    %55 = arith.mulf %53, %54 : vector<3x200xf32>
    %56 = arith.addf %50, %55 : vector<3x200xf32>
    %57 = vector.extract_strided_slice %3 {offsets = [0, 3], sizes = [3, 1], strides = [1, 1]} : vector<3x10xf32> to vector<3x1xf32>
    %58 = vector.extract_strided_slice %36 {offsets = [3, 0], sizes = [1, 200], strides = [1, 1]} : vector<10x200xf32> to vector<1x200xf32>
    %59 = vector.broadcast %57 : vector<3x1xf32> to vector<3x200xf32>
    %60 = vector.broadcast %58 : vector<1x200xf32> to vector<3x200xf32>
    %61 = arith.mulf %59, %60 : vector<3x200xf32>
    %62 = arith.addf %56, %61 : vector<3x200xf32>
    %63 = vector.extract_strided_slice %3 {offsets = [0, 4], sizes = [3, 1], strides = [1, 1]} : vector<3x10xf32> to vector<3x1xf32>
    %64 = vector.extract_strided_slice %36 {offsets = [4, 0], sizes = [1, 200], strides = [1, 1]} : vector<10x200xf32> to vector<1x200xf32>
    %65 = vector.broadcast %63 : vector<3x1xf32> to vector<3x200xf32>
    %66 = vector.broadcast %64 : vector<1x200xf32> to vector<3x200xf32>
    %67 = arith.mulf %65, %66 : vector<3x200xf32>
    %68 = arith.addf %62, %67 : vector<3x200xf32>
    %69 = vector.extract_strided_slice %3 {offsets = [0, 5], sizes = [3, 1], strides = [1, 1]} : vector<3x10xf32> to vector<3x1xf32>
    %70 = vector.extract_strided_slice %36 {offsets = [5, 0], sizes = [1, 200], strides = [1, 1]} : vector<10x200xf32> to vector<1x200xf32>
    %71 = vector.broadcast %69 : vector<3x1xf32> to vector<3x200xf32>
    %72 = vector.broadcast %70 : vector<1x200xf32> to vector<3x200xf32>
    %73 = arith.mulf %71, %72 : vector<3x200xf32>
    %74 = arith.addf %68, %73 : vector<3x200xf32>
    %75 = vector.extract_strided_slice %3 {offsets = [0, 6], sizes = [3, 1], strides = [1, 1]} : vector<3x10xf32> to vector<3x1xf32>
    %76 = vector.extract_strided_slice %36 {offsets = [6, 0], sizes = [1, 200], strides = [1, 1]} : vector<10x200xf32> to vector<1x200xf32>
    %77 = vector.broadcast %75 : vector<3x1xf32> to vector<3x200xf32>
    %78 = vector.broadcast %76 : vector<1x200xf32> to vector<3x200xf32>
    %79 = arith.mulf %77, %78 : vector<3x200xf32>
    %80 = arith.addf %74, %79 : vector<3x200xf32>
    %81 = vector.extract_strided_slice %3 {offsets = [0, 7], sizes = [3, 1], strides = [1, 1]} : vector<3x10xf32> to vector<3x1xf32>
    %82 = vector.extract_strided_slice %36 {offsets = [7, 0], sizes = [1, 200], strides = [1, 1]} : vector<10x200xf32> to vector<1x200xf32>
    %83 = vector.broadcast %81 : vector<3x1xf32> to vector<3x200xf32>
    %84 = vector.broadcast %82 : vector<1x200xf32> to vector<3x200xf32>
    %85 = arith.mulf %83, %84 : vector<3x200xf32>
    %86 = arith.addf %80, %85 : vector<3x200xf32>
    %87 = vector.extract_strided_slice %3 {offsets = [0, 8], sizes = [3, 1], strides = [1, 1]} : vector<3x10xf32> to vector<3x1xf32>
    %88 = vector.extract_strided_slice %36 {offsets = [8, 0], sizes = [1, 200], strides = [1, 1]} : vector<10x200xf32> to vector<1x200xf32>
    %89 = vector.broadcast %87 : vector<3x1xf32> to vector<3x200xf32>
    %90 = vector.broadcast %88 : vector<1x200xf32> to vector<3x200xf32>
    %91 = arith.mulf %89, %90 : vector<3x200xf32>
    %92 = arith.addf %86, %91 : vector<3x200xf32>
    %93 = vector.extract_strided_slice %3 {offsets = [0, 9], sizes = [3, 1], strides = [1, 1]} : vector<3x10xf32> to vector<3x1xf32>
    %94 = vector.extract_strided_slice %36 {offsets = [9, 0], sizes = [1, 200], strides = [1, 1]} : vector<10x200xf32> to vector<1x200xf32>
    %95 = vector.broadcast %93 : vector<3x1xf32> to vector<3x200xf32>
    %96 = vector.broadcast %94 : vector<1x200xf32> to vector<3x200xf32>
    %97 = arith.mulf %95, %96 : vector<3x200xf32>
    %98 = arith.addf %92, %97 : vector<3x200xf32>
    %cst_11 = arith.constant dense<0xFF800000> : vector<200xf32>
    %99 = vector.multi_reduction <maximumf>, %98, %cst_11 [0] : vector<3x200xf32> to vector<200xf32>
    %100 = vector.shape_cast %99 : vector<200xf32> to vector<1x200xf32>
    %101 = vector.broadcast %100 : vector<1x200xf32> to vector<3x200xf32>
    %102 = arith.subf %98, %101 : vector<3x200xf32>
    %103 = math.exp %102 : vector<3x200xf32>
    %cst_12 = arith.constant dense<0.000000e+00> : vector<200xf32>
    %104 = vector.multi_reduction <add>, %103, %cst_12 [0] : vector<3x200xf32> to vector<200xf32>
    %105 = vector.shape_cast %104 : vector<200xf32> to vector<1x200xf32>
    %106 = tpu.reciprocal %105 : vector<1x200xf32> -> vector<1x200xf32>
    %107 = vector.broadcast %106 : vector<1x200xf32> to vector<3x200xf32>
    %108 = arith.mulf %103, %107 : vector<3x200xf32>
    %c0_13 = arith.constant 0 : index
    %c0_14 = arith.constant 0 : index
    %109 = vector.load %arg6[%c0_13, %c0_14] : memref<3x200xf32, #tpu.memory_space<vmem>>, vector<3x200xf32>
    tpu.vector_store %arg6[%c0_13, %c0_14], %108 {strides = array<i32>} : memref<3x200xf32, #tpu.memory_space<vmem>>, vector<3x200xf32>,
    return
  }
  func.func @transform_0(%arg0: i32) -> (i32, i32) {
    %c0_i32 = arith.constant 0 : i32
    %c0_i32_0 = arith.constant 0 : i32
    return %arg0, %c0_i32 : i32, i32
  }
  func.func @transform_1(%arg0: i32) -> (i32, i32) {
    %c0_i32 = arith.constant 0 : i32
    %c0_i32_0 = arith.constant 0 : i32
    %c0_i32_1 = arith.constant 0 : i32
    return %c0_i32, %c0_i32_0 : i32, i32
  }
  func.func @transform_2(%arg0: i32) -> (i32, i32) {
    %c0_i32 = arith.constant 0 : i32
    %c0_i32_0 = arith.constant 0 : i32
    %c0_i32_1 = arith.constant 0 : i32
    return %c0_i32, %c0_i32_0 : i32, i32
  }
  func.func @transform_3(%arg0: i32) -> (i32, i32) {
    %c0_i32 = arith.constant 0 : i32
    %c0_i32_0 = arith.constant 0 : i32
    %c0_i32_1 = arith.constant 0 : i32
    return %c0_i32, %c0_i32_0 : i32, i32
  }
  func.func @transform_4(%arg0: i32) -> (i32, i32) {
    %c0_i32 = arith.constant 0 : i32
    %c0_i32_0 = arith.constant 0 : i32
    %c0_i32_1 = arith.constant 0 : i32
    return %c0_i32, %c0_i32_0 : i32, i32
  }
  func.func @transform_5(%arg0: i32) -> (i32, i32) {
    %c0_i32 = arith.constant 0 : i32
    %c0_i32_0 = arith.constant 0 : i32
    return %c0_i32, %arg0 : i32, i32
  }
}

</mosaic_0001>

<bundles_post_ra>
// kernel: mlp_forward.1
= control target key start
LH: loop header
LB: loop body
LE: loop exit
PB: predicated region body
PF: predicated region fallthrough
CT: control target
= control target key end

     0   :  { %v537_v2 = vmov 0   ;;  %v538_v6 = vmov 3   ;;  %s724_s0 = inlined_call_operand.vmem [shape: f32[200,4], index: 0, kind: input, shape index: {}]   ;;  %s725_s1 = inlined_call_operand.vmem [shape: f32[10,4], index: 1, kind: input, shape index: {}]   ;;  %s726_s2 = inlined_call_operand.vmem [shape: f32[10,1], index: 2, kind: input, shape index: {}]   ;;  %s727_s3 = inlined_call_operand.vmem [shape: f32[3,10], index: 3, kind: input, shape index: {}]   ;;  %s728_s4 = inlined_call_operand.vmem [shape: f32[3,1], index: 4, kind: input, shape index: {}]   ;;  %s729_s5 = inlined_call_operand.hbm [shape: f32[3,200], index: 5, kind: output, shape index: {}]  }
   0x1   :  { %v37_v0 = vld [vmem:[%s724_s0 + $0x80] sm:$0xff]  ;;  %479 = vset.pattern.permute.xlu0 %v537_v2  ;;  %v38_v3 = vld [vmem:[%s724_s0 + $0x88] sm:$0xff]  ;;  %v39_v5 = vld [vmem:[%s724_s0 + $0x90] sm:$0xff] }
   0x2   :  { %v110_v1 = vld [vmem:[%s725_s1] sm:$0xff]  ;;  %78 = vxpose.xlu1.b32.start [1/9] (short) (narrow) %v37_v0, 8  ;;  %v40_v7 = vld [vmem:[%s724_s0 + $0x98] sm:$0xff] }
   0x3   :  { %117 = vperm.xlu0 %479, %v110_v1   ;;  %v113_v4 = vld [vmem:[%s726_s2] sm:$0xff] }
   0x6   :  { %79 = vxpose.xlu1.b32.cont [2/9] (short) (narrow) %v38_v3, 8 }
   0x7   :  { %139 = vperm.xlu0 %479, %v113_v4  }
   0xa   :  { %80 = vxpose.xlu1.b32.cont [3/9] (short) (narrow) %v39_v5, 8 }
   0xb   :  { %480 = vset.pattern.permute.xlu0 %v538_v6 }
   0xc   :  { %10 = vsyncpa [#allocation3], 0  ;;  %200 = vperm.xlu0 %480, %v110_v1   ;;  %v111_v8 = vld [vmem:[%s725_s1 + $0x8] sm:$0x3]  ;;  %v41_v9 = vld [vmem:[%s724_s0 + $0xa0] sm:$0xff]  ;;  %v539_v10 = vmov 1   ;;  %v125_v45 = vlaneseq }
   0xd   :  { %v42_v11 = vld [vmem:[%s724_s0 + $0xa8] sm:$0xff]  ;;  %v43_v12 = vld [vmem:[%s724_s0 + $0xb0] sm:$0xff]  ;;  %v44_v13 = vld [vmem:[%s724_s0 + $0xb8] sm:$0xff]  ;;  %v540_v22 = vmov 2   ;;  %v541_v34 = vmov 4   ;;  %v542_v35 = vmov 5  }
   0xe   :  { %81 = vxpose.xlu1.b32.cont [4/9] (short) (narrow) %v40_v7, 8  ;;  %v45_v14 = vld [vmem:[%s724_s0 + $0xc0] sm:$0xff]  ;;  %v22_v16 = vld [vmem:[%s724_s0 + $0x8] sm:$0xff]  ;;  %v23_v17 = vld [vmem:[%s724_s0 + $0x10] sm:$0xff]  ;;  %v543_v36 = vmov 6   ;;  %v544_v37 = vmov 7  }
   0xf   :  { %v21_v15 = vld [vmem:[%s724_s0] sm:$0xff]  ;;  %v24_v18 = vld [vmem:[%s724_s0 + $0x18] sm:$0xff]  ;;  %v26_v20 = vld [vmem:[%s724_s0 + $0x28] sm:$0xff]  ;;  %v545_v38 = vmov 9   ;;  %v546_v40 = vmov 8   ;;  %v678_v47 = vshrl.u32 %v125_v45, 7 }
  0x10   :  { %481 = vset.pattern.permute.xlu0 %v539_v10  ;;  %v25_v19 = vld [vmem:[%s724_s0 + $0x20] sm:$0xff]  ;;  %v27_v21 = vld [vmem:[%s724_s0 + $0x30] sm:$0xff]  ;;  %v28_v23 = vld [vmem:[%s724_s0 + $0x38] sm:$0xff]  ;;  %vm414_vm0 = vcmask 583680   ;;  %vm406_vm1 = vcmask 1042432   ;;  %vm450_vm2 = vcmask 587780  }
  0x11   :  { %156 = vperm.xlu0 %481, %v111_v8   ;;  %v114_v24 = vld [vmem:[%s726_s2 + $0x8] sm:$0x3]  ;;  %v29_v25 = vld [vmem:[%s724_s0 + $0x40] sm:$0xff]  ;;  %v31_v27 = vld [vmem:[%s724_s0 + $0x50] sm:$0xff]  ;;  %v681_v50 = vsub.s32 0, %v678_v47  ;;  %v685_v54 = vsub.s32 1, %v678_v47 }
  0x12   :  { %82 = vxpose.xlu1.b32.cont [5/9] (short) (narrow) %v41_v9, 8  ;;  %v30_v26 = vld [vmem:[%s724_s0 + $0x48] sm:$0xff]  ;;  %v32_v28 = vld [vmem:[%s724_s0 + $0x58] sm:$0xff]  ;;  %v112_v29 = vld [vmem:[%s727_s3] sm:$0x7]  ;;  %v688_v55 = vsub.s32 2, %v678_v47 }
  0x13   :  { %v33_v30 = vld [vmem:[%s724_s0 + $0x60] sm:$0xff]  ;;  %v34_v31 = vld [vmem:[%s724_s0 + $0x68] sm:$0xff]  ;;  %v35_v32 = vld [vmem:[%s724_s0 + $0x70] sm:$0xff]  ;;  %v696_v0 = vsub.s32 3, %v678_v47 }
  0x14   :  { %v36_v33 = vld [vmem:[%s724_s0 + $0x78] sm:$0xff]  ;;  %v239_v39 = vld [vmem:[%s728_s4] sm:$0x7]  ;;  %s547_s4 = smov [#allocation2]   ;;  %vm451_vm3 = vmor %vm450_vm2, %vm406_vm1 }
  0x15   :  { %s459_s25 = sshll.u32 %s547_s4, 4  ;;  %s460_s25 = int_to_ptr.vmem [resolvable:$true] %s459_s25 }
  0x16   :  { %83 = vxpose.xlu1.b32.cont [6/9] (short) (narrow) %v42_v11, 8  ;;  %s515_s26 = scalar_lea.vmem %s460_s25, 128  ;;  %p520_p1 = scmp.lt.s32.totalorder %s460_s25, %s460_s25 }
  0x17   :  { %p516_p0 = scmp.ne.s32.totalorder %s460_s25, %s515_s26  ;;  %p521_p2 = scmp.lt.s32.totalorder %s515_s26, %s515_s26 }
  0x19   :  { %p522_p3 = por %p521_p2, %p520_p1 }
  0x1a   :  { %84 = vxpose.xlu1.b32.cont [7/9] (short) (narrow) %v43_v12, 8 }
  0x1b   :  { %p523_p4 = pnand %p522_p3, %p516_p0 }
  0x1e   :  { %85 = vxpose.xlu1.b32.cont [8/9] (short) (narrow) %v44_v13, 8 }
  0x22   :  { %86 = vxpose.xlu1.b32.end [9/9] (short) (narrow) %v45_v14, 8 }
  0x2f   :  { %46 = vxpose.xlu0.b32.start [1/16] (narrow) %v21_v15, 8 }
  0x33   :  { %47 = vxpose.xlu0.b32.cont [2/16] (narrow) %v22_v16, 8 }
  0x37   :  { %48 = vxpose.xlu0.b32.cont [3/16] (narrow) %v23_v17, 8 }
  0x3b   :  { %49 = vxpose.xlu0.b32.cont [4/16] (narrow) %v24_v18, 8 }
  0x3f   :  { %50 = vxpose.xlu0.b32.cont [5/16] (narrow) %v25_v19, 8 }
  0x40   :  { %482 = vset.pattern.permute.xlu1 %v539_v10 }
  0x41   :  { %152 = vperm.xlu1 %482, %v110_v1  }
  0x43   :  { %51 = vxpose.xlu0.b32.cont [6/16] (narrow) %v26_v20, 8 }
  0x45   :  { %483 = vset.pattern.permute.xlu1 %v540_v22 }
  0x46   :  { %176 = vperm.xlu1 %483, %v110_v1  }
  0x47   :  { %52 = vxpose.xlu0.b32.cont [7/16] (narrow) %v27_v21, 8 }
  0x4a   :  { %484 = vset.pattern.permute.xlu1 %v537_v2 }
  0x4b   :  { %122 = vperm.xlu1 %484, %v111_v8   ;;  %53 = vxpose.xlu0.b32.cont [8/16] (narrow) %v28_v23, 8 }
  0x4f   :  { %144 = vperm.xlu1 %484, %v114_v24   ;;  %54 = vxpose.xlu0.b32.cont [9/16] (narrow) %v29_v25, 8 }
  0x53   :  { %485 = vset.pattern.permute.xlu1 %v540_v22  ;;  %55 = vxpose.xlu0.b32.cont [10/16] (narrow) %v30_v26, 8 }
  0x54   :  { %180 = vperm.xlu1 %485, %v111_v8  }
  0x57   :  { %56 = vxpose.xlu0.b32.cont [11/16] (narrow) %v31_v27, 8 }
  0x58   :  { %486 = vset.pattern.permute.xlu1 %v538_v6 }
  0x59   :  { %204 = vperm.xlu1 %486, %v111_v8  }
  0x5b   :  { %57 = vxpose.xlu0.b32.cont [12/16] (narrow) %v32_v28, 8 }
  0x5d   :  { %487 = vset.pattern.permute.xlu1 %v537_v2 }
  0x5e   :  { %242 = vperm.xlu1 %487, %v112_v29  }
  0x5f   :  { %58 = vxpose.xlu0.b32.cont [13/16] (narrow) %v33_v30, 8 }
  0x62   :  { %489 = vset.pattern.permute.xlu1 %v539_v10 }
  0x63   :  { %263 = vperm.xlu1 %489, %v112_v29   ;;  %59 = vxpose.xlu0.b32.cont [14/16] (narrow) %v34_v31, 8 }
  0x67   :  { %490 = vset.pattern.permute.xlu1 %v540_v22  ;;  %60 = vxpose.xlu0.b32.cont [15/16] (narrow) %v35_v32, 8 }
  0x68   :  { %279 = vperm.xlu1 %490, %v112_v29  }
  0x6b   :  { %61 = vxpose.xlu0.b32.end [16/16] (narrow) %v36_v33, 8 }
  0x6c   :  { %491 = vset.pattern.permute.xlu1 %v538_v6 }
  0x6d   :  { %295 = vperm.xlu1 %491, %v112_v29  }
  0x71   :  { %492 = vset.pattern.permute.xlu1 %v541_v34 }
  0x72   :  { %311 = vperm.xlu1 %492, %v112_v29  }
  0x76   :  { %493 = vset.pattern.permute.xlu1 %v542_v35 }
  0x77   :  { %327 = vperm.xlu1 %493, %v112_v29  }
  0x7b   :  { %494 = vset.pattern.permute.xlu1 %v543_v36 }
  0x7c   :  { %343 = vperm.xlu1 %494, %v112_v29  }
  0x7e   :  { %v118_v41 = vpop.permute.xlu0 %117  ;;  %v94_v42 = vpop.trf.xlu1 }
  0x7f   :  { %v132_v53 = vrot.slane %v94_v42, %v681_v50  ;;  %v166_v58 = vrot.slane %v94_v42, %v685_v54  ;;  %v190_v59 = vrot.slane %v94_v42, %v688_v55  ;;  %v214_v7 = vrot.slane %v94_v42, %v696_v0 }
  0x80   :  { %495 = vset.pattern.permute.xlu1 %v544_v37 }
  0x81   :  { %359 = vperm.xlu1 %495, %v112_v29   ;;  %v134_v57 = vmul.f32 %v132_v53, %v118_v41 }
  0x82   :  { %v140_v43 = vpop.permute.xlu0 %139 }
  0x83   :  { %v148_v3 = vadd.f32 %v140_v43, %v134_v57 }
  0x85   :  { %497 = vset.pattern.permute.xlu1 %v545_v38 }
  0x86   :  { %391 = vperm.xlu1 %497, %v112_v29  }
  0x87   :  { %v201_v46 = vpop.permute.xlu0 %200 }
  0x88   :  { %v216_v14 = vmul.f32 %v214_v7, %v201_v46 }
  0x8c   :  { %v157_v49 = vpop.permute.xlu0 %156 }
  0x94   :  { %488 = vset.pattern.permute.xlu0 %v537_v2 }
  0x95   :  { %257 = vperm.xlu0 %488, %v239_v39  }
  0x99   :  { %496 = vset.pattern.permute.xlu0 %v546_v40 }
  0x9a   :  { %375 = vperm.xlu0 %496, %v112_v29   ;;  %v170_v29 = vmul.f32 %v166_v58, %v157_v49 }
  0x9e   :  { %498 = vset.pattern.permute.xlu0 %v545_v38 }
  0xab   :  { %v62_v51 = vpop.trf.xlu0 }
  0xac   :  { %v128_v56 = vrot.slane %v62_v51, %v681_v50  ;;  %v162_v62 = vrot.slane %v62_v51, %v685_v54  ;;  %v186_v63 = vrot.slane %v62_v51, %v688_v55  ;;  %v210_v11 = vrot.slane %v62_v51, %v696_v0 }
  0xae   :  { %v133_v61 = vmul.f32 %v128_v56, %v118_v41  ;;  %v215_v15 = vmul.f32 %v210_v11, %v201_v46  ;;  %v169_v27 = vmul.f32 %v162_v62, %v157_v49 }
  0xb0   :  { %v147_v5 = vadd.f32 %v140_v43, %v133_v61 }
  0xbc   :  { %v153_v44 = vpop.permute.xlu1 %152 }
  0xbd   :  { %v168_v1 = vmul.f32 %v166_v58, %v153_v44  ;;  %v167_v2 = vmul.f32 %v162_v62, %v153_v44 }
  0xbf   :  { %v172_v8 = vadd.f32 %v168_v1, %v148_v3  ;;  %v171_v10 = vadd.f32 %v167_v2, %v147_v5  ;;  %v316_v1 = vsub.s32 4, %v678_v47 }
  0xc1   :  { %v177_v48 = vpop.permute.xlu1 %176 }
  0xc2   :  { %v192_v4 = vmul.f32 %v190_v59, %v177_v48  ;;  %v191_v6 = vmul.f32 %v186_v63, %v177_v48 }
  0xc4   :  { %v196_v12 = vadd.f32 %v192_v4, %v172_v8  ;;  %v195_v13 = vadd.f32 %v191_v6, %v171_v10  ;;  %v332_v10 = vsub.s32 5, %v678_v47 }
  0xc6   :  { %v123_v52 = vpop.permute.xlu1 %122  ;;  %v220_v16 = vadd.f32 %v216_v14, %v196_v12  ;;  %v219_v18 = vadd.f32 %v215_v15, %v195_v13 }
  0xc7   :  { %v135_v21 = vmul.f32 %v128_v56, %v123_v52  ;;  %v136_v23 = vmul.f32 %v132_v53, %v123_v52 }
  0xc8   :  { %v224_v19 = vmul.f32 0.5, %v220_v16  ;;  %v223_v22 = vmul.f32 0.5, %v219_v18 }
  0xca   :  { %v145_v60 = vpop.permute.xlu1 %144  ;;  %499 = vtanh.f32 %v224_v19 }
  0xcb   :  { %v149_v24 = vadd.f32 %v145_v60, %v135_v21  ;;  %501 = vtanh.f32 %v223_v22  ;;  %v150_v25 = vadd.f32 %v145_v60, %v136_v23 }
  0xcd   :  { %v173_v31 = vadd.f32 %v169_v27, %v149_v24  ;;  %v174_v33 = vadd.f32 %v170_v29, %v150_v25 }
  0xcf   :  { %v181_v9 = vpop.permute.xlu1 %180 }
  0xd0   :  { %v193_v28 = vmul.f32 %v186_v63, %v181_v9  ;;  %v194_v30 = vmul.f32 %v190_v59, %v181_v9 }
  0xd2   :  { %v197_v35 = vadd.f32 %v193_v28, %v173_v31  ;;  %v198_v36 = vadd.f32 %v194_v30, %v174_v33 }
  0xd4   :  { %v205_v17 = vpop.permute.xlu1 %204 }
  0xd5   :  { %v217_v32 = vmul.f32 %v210_v11, %v205_v17  ;;  %v218_v34 = vmul.f32 %v214_v7, %v205_v17  ;;  %v348_v11 = vsub.s32 6, %v678_v47 }
  0xd7   :  { %v221_v38 = vadd.f32 %v217_v32, %v197_v35  ;;  %v222_v39 = vadd.f32 %v218_v34, %v198_v36  ;;  %v500_v40 = vpop.eup %499 }
  0xd8   :  { %v502_v42 = vpop.eup %501  ;;  %v232_v45 = vmul.f32 0.5, %v500_v40 }
  0xd9   :  { %v243_v20 = vpop.permute.xlu1 %242  ;;  %v225_v41 = vmul.f32 0.5, %v221_v38  ;;  %v226_v43 = vmul.f32 0.5, %v222_v39  ;;  %v231_v46 = vmul.f32 0.5, %v502_v42 }
  0xda   :  { %v236_v49 = vadd.f32 0.5, %v232_v45 }
  0xdb   :  { %503 = vtanh.f32 %v225_v41  ;;  %v235_v51 = vadd.f32 0.5, %v231_v46 }
  0xdc   :  { %505 = vtanh.f32 %v226_v43  ;;  %v252_v52 = vrot.slane %v236_v49, %v681_v50  ;;  %v273_v57 = vrot.slane %v236_v49, %v685_v54  ;;  %v289_v62 = vrot.slane %v236_v49, %v688_v55 }
  0xdd   :  { %v248_v53 = vrot.slane %v235_v51, %v681_v50  ;;  %v269_v58 = vrot.slane %v235_v51, %v685_v54  ;;  %v285_v63 = vrot.slane %v235_v51, %v688_v55  ;;  %v305_v8 = vrot.slane %v236_v49, %v696_v0 }
  0xde   :  { %v264_v26 = vpop.permute.xlu1 %263  ;;  %v254_v60 = vmul.f32 %v252_v52, %v243_v20  ;;  %v301_v9 = vrot.slane %v235_v51, %v696_v0  ;;  %v321_v16 = vrot.slane %v236_v49, %v316_v1  ;;  %v317_v17 = vrot.slane %v235_v51, %v316_v1 }
  0xdf   :  { %v253_v59 = vmul.f32 %v248_v53, %v243_v20  ;;  %v274_v4 = vmul.f32 %v269_v58, %v264_v26  ;;  %v275_v5 = vmul.f32 %v273_v57, %v264_v26  ;;  %v337_v24 = vrot.slane %v236_v49, %v332_v10 }
  0xe0   :  { %v333_v25 = vrot.slane %v235_v51, %v332_v10  ;;  %v364_v0 = vsub.s32 7, %v678_v47  ;;  %v353_v30 = vrot.slane %v236_v49, %v348_v11  ;;  %v349_v31 = vrot.slane %v235_v51, %v348_v11 }
  0xe2   :  { %v369_v39 = vrot.slane %v236_v49, %v364_v0  ;;  %v365_v40 = vrot.slane %v235_v51, %v364_v0 }
  0xe3   :  { %v280_v37 = vpop.permute.xlu1 %279 }
  0xe4   :  { %v290_v13 = vmul.f32 %v285_v63, %v280_v37  ;;  %v291_v14 = vmul.f32 %v289_v62, %v280_v37 }
  0xe8   :  { %v296_v44 = vpop.permute.xlu1 %295  ;;  %v504_v61 = vpop.eup %503 }
  0xe9   :  { %v506_v3 = vpop.eup %505  ;;  %v233_v19 = vmul.f32 0.5, %v504_v61  ;;  %v306_v20 = vmul.f32 %v301_v9, %v296_v44  ;;  %v307_v21 = vmul.f32 %v305_v8, %v296_v44 }
  0xea   :  { %v234_v18 = vmul.f32 0.5, %v506_v3 }
  0xeb   :  { %v237_v34 = vadd.f32 0.5, %v233_v19 }
  0xec   :  { %v238_v33 = vadd.f32 0.5, %v234_v18 }
  0xed   :  { %v312_v48 = vpop.permute.xlu1 %311  ;;  %v381_v47 = vrot.slane %v237_v34, %v681_v50 }
  0xee   :  { %v322_v26 = vmul.f32 %v317_v17, %v312_v48  ;;  %v323_v27 = vmul.f32 %v321_v16, %v312_v48  ;;  %v385_v45 = vrot.slane %v238_v33, %v681_v50  ;;  %v401_v58 = vrot.slane %v238_v33, %v685_v54 }
  0xf2   :  { %v328_v56 = vpop.permute.xlu1 %327 }
  0xf3   :  { %v338_v35 = vmul.f32 %v333_v25, %v328_v56  ;;  %v339_v36 = vmul.f32 %v337_v24, %v328_v56 }
  0xf7   :  { %v344_v12 = vpop.permute.xlu1 %343 }
  0xf8   :  { %v354_v41 = vmul.f32 %v349_v31, %v344_v12  ;;  %v355_v42 = vmul.f32 %v353_v30, %v344_v12 }
  0xfc   :  { %v360_v32 = vpop.permute.xlu1 %359 }
  0xfd   :  { %v370_v48 = vmul.f32 %v365_v40, %v360_v32  ;;  %v371_v52 = vmul.f32 %v369_v39, %v360_v32 }
 0x101   :  { %v392_v56 = vpop.permute.xlu1 %391 }
 0x102   :  { %v403_v63 = vmul.f32 %v401_v58, %v392_v56 }
 0x110   :  { %v258_v2 = vpop.permute.xlu0 %257 }
 0x111   :  { %v260_v6 = vadd.f32 %v258_v2, %v253_v59  ;;  %v261_v7 = vadd.f32 %v258_v2, %v254_v60  ;;  %v397_v59 = vrot.slane %v237_v34, %v685_v54 }
 0x113   :  { %v276_v55 = vadd.f32 %v274_v4, %v260_v6  ;;  %v277_v15 = vadd.f32 %v275_v5, %v261_v7  ;;  %v402_v62 = vmul.f32 %v397_v59, %v392_v56 }
 0x115   :  { %v292_v22 = vadd.f32 %v290_v13, %v276_v55  ;;  %v293_v23 = vadd.f32 %v291_v14, %v277_v15  ;;  %v376_v46 = vpop.permute.xlu0 %375 }
 0x116   :  { %v386_v60 = vmul.f32 %v381_v47, %v376_v46  ;;  %v387_v61 = vmul.f32 %v385_v45, %v376_v46 }
 0x117   :  { %v308_v28 = vadd.f32 %v306_v20, %v292_v22  ;;  %v309_v29 = vadd.f32 %v307_v21, %v293_v23 }
 0x119   :  { %v324_v37 = vadd.f32 %v322_v26, %v308_v28  ;;  %v325_v38 = vadd.f32 %v323_v27, %v309_v29 }
 0x11b   :  { %v340_v43 = vadd.f32 %v338_v35, %v324_v37  ;;  %v341_v44 = vadd.f32 %v339_v36, %v325_v38 }
 0x11d   :  { %v356_v53 = vadd.f32 %v354_v41, %v340_v43  ;;  %v357_v57 = vadd.f32 %v355_v42, %v341_v44 }
 0x11f   :  { %v372_v49 = vadd.f32 %v370_v48, %v356_v53  ;;  %v373_v51 = vadd.f32 %v371_v52, %v357_v57 }
 0x121   :  { %v388_v1 = vadd.f32 %v386_v60, %v372_v49  ;;  %v389_v2 = vadd.f32 %v387_v61, %v373_v51 }
 0x123   :  { %v404_v50 = vadd.f32 %v402_v62, %v388_v1  ;;  %v405_v3 = vadd.f32 %v403_v63, %v389_v2 }
 0x125   :  { %v415_v4 = vsel %vm414_vm0, %v405_v3, -inf  ;;  %v407_v5 = vsel %vm406_vm1, %v404_v50, -inf }
 0x126   :  { %v416_v6 = vrot.slane %v415_v4, 4  ;;  %v408_v7 = vrot.slane %v407_v5, 4 }
 0x128   :  { %v417_v8 = vmax.f32 %v415_v4, %v416_v6  ;;  %v409_v54 = vmax.f32 %v407_v5, %v408_v7 }
 0x12a   :  { %v418_v9 = vrot.slane %v417_v8, 2  ;;  %v410_v10 = vrot.slane %v409_v54, 2 }
 0x12c   :  { %v419_v11 = vmax.f32 %v417_v8, %v418_v9  ;;  %v411_v12 = vmax.f32 %v409_v54, %v410_v10 }
 0x12e   :  { %v420_v13 = vrot.slane %v419_v11, 1  ;;  %v412_v14 = vrot.slane %v411_v12, 1 }
 0x130   :  { %v421_v55 = vmax.f32 %v419_v11, %v420_v13  ;;  %v413_v15 = vmax.f32 %v411_v12, %v412_v14 }
 0x132   :  { %v423_v16 = vsub.f32 %v405_v3, %v421_v55  ;;  %v422_v17 = vsub.f32 %v404_v50, %v413_v15 }
 0x134   :  { %v426_v18 = vmul.f32 1.442695, %v423_v16  ;;  %v424_v19 = vmul.f32 1.442695, %v422_v17 }
 0x136   :  { %507 = vpow2.f32 %v426_v18 }
 0x137   :  { %509 = vpow2.f32 %v424_v19 }
 0x143   :  { %v508_v20 = vpop.eup %507 }
 0x144   :  { %v510_v21 = vpop.eup %509  ;;  %v435_v22 = vsel %vm414_vm0, %v508_v20, 0.0 }
 0x145   :  { %v436_v23 = vrot.slane %v435_v22, 4  ;;  %v428_v24 = vsel %vm406_vm1, %v510_v21, 0.0 }
 0x146   :  { %v429_v25 = vrot.slane %v428_v24, 4 }
 0x147   :  { %v437_v0 = vadd.f32 %v436_v23, %v435_v22 }
 0x148   :  { %v430_v26 = vadd.f32 %v429_v25, %v428_v24 }
 0x149   :  { %v438_v27 = vrot.slane %v437_v0, 2 }
 0x14a   :  { %v431_v28 = vrot.slane %v430_v26, 2 }
 0x14b   :  { %v439_v29 = vadd.f32 %v438_v27, %v437_v0 }
 0x14c   :  { %v432_v30 = vadd.f32 %v431_v28, %v430_v26 }
 0x14d   :  { %v440_v31 = vrot.slane %v439_v29, 1 }
 0x14e   :  { %v433_v32 = vrot.slane %v432_v30, 1 }
 0x14f   :  { %v441_v33 = vadd.f32 %v440_v31, %v439_v29 }
 0x150   :  { %v434_v34 = vadd.f32 %v433_v32, %v432_v30 }
 0x151   :  { %511 = vrcp.f32 %v441_v33 }
 0x152   :  { %513 = vrcp.f32 %v434_v34 }
 0x15e   :  { %v512_v35 = vpop.eup %511 }
 0x15f   :  { %v514_v36 = vpop.eup %513  ;;  %v445_v37 = vmul.f32 %v512_v35, %v508_v20 }
 0x160   :  { %v444_v38 = vmul.f32 %v514_v36, %v510_v21 }
 0x162   :  { %v448_v39 = vcombine.low %v444_v38, %v445_v37 }
 0x164   :  { %452 = vst.msk [vmem:[#allocation2] sm:$0x77] %vm451_vm3, %v448_v39 }
 0x165   :  { %526 = shalt.err (!%p523_p4)
}
 0x166   :  { %462 = dma.vmem_to_hbm [thread:$0]  %s460_s25, 128, %s729_s5, [#allocation3]  }
 0x167   :  { %535 = dma.done.wait [#allocation3], 128  }
 0x168   :  { %536 = vsyncadd [#allocation3], 4294967168 }
 0x169   :  { %466 = vsyncpa [#allocation3], 1 }

</bundles_post_ra>
